<compile_context>
chip_gen: v7x
topology: tpu7x:2x2x1
jax: 0.10.0
libtpu: 0.0.40
codegen_flags: <defaults>
</compile_context>

<pallas_src>
import functools

import numpy as np
import jax
import jax.numpy as jnp
from jax.experimental import pallas as pl
from jax.experimental.pallas import tpu as pltpu

KERNEL_SIZE = 3
DILATION = 4                      # dilations[0]; only anticonv1 participates in forward()
PAD = (KERNEL_SIZE + (KERNEL_SIZE - 1) * (DILATION - 1) - 1) // 2   # = 4
EPS = 1e-5                        # BatchNorm2d default


def _stack_taps(x, T, V):
    """x: (C8, (T+2*PAD)*V) padded sample -> (3*C8, T*V) im2col stack of the taps.

    Row-block j holds x[t + PAD - j*DILATION] (zeros outside [0,T) via the pad),
    i.e. padded-time offsets 2*PAD, PAD, 0 -> flattened offsets 8V, 4V, 0.
    Block 1 (offset PAD) is also the residual 1x1-conv input x[t].
    """
    TV = T * V
    return jnp.concatenate(
        [x[:, 2 * PAD * V: 2 * PAD * V + TV],
         x[:, PAD * V: PAD * V + TV],
         x[:, 0:TV]],
        axis=0)


def _stats_kernel(x_ref, w_ref, sum_ref, sq_ref, *, T, V):
    # x_ref: (C8, (T+2*PAD)*V); w_ref: (2*O, 3*C8); outputs: (2*O, 1) partials.
    xs = _stack_taps(x_ref[...], T, V)                                # (3C8, T*V)
    z = jnp.dot(w_ref[...], xs, preferred_element_type=jnp.float32)  # (2O, T*V)
    sum_ref[...] = jnp.sum(z, axis=1, keepdims=True)
    sq_ref[...] = jnp.sum(z * z, axis=1, keepdims=True)


def _apply_kernel(x_ref, w_ref, c_ref, out_ref, *, T, V):
    # x_ref: (C8, (T+2*PAD)*V); w_ref: (O, 3*C8); c_ref: (O, 1); out_ref: (O, T*V)
    xs = _stack_taps(x_ref[...], T, V)
    y = jnp.dot(w_ref[...], xs, preferred_element_type=jnp.float32)
    out_ref[...] = (y + c_ref[...]).astype(out_ref.dtype)


def multiscale_anti_tconv(x, params):
    """x: (N, C_in, T, V) NCHW float. Returns (N, C_out, T, V), matching PyTorch forward."""
    w1, b1, g1, bt1, wr, br, gr, btr = params
    del b1, br   # conv biases cancel exactly through training-mode BatchNorm
    N, C, T, V = x.shape
    O = w1.shape[1]
    TV = T * V
    Tp = T + 2 * PAD
    C8 = -(-C // 8) * 8                   # sublane-align the channel axis

    # Glue: zero-pad time (and channels up to a multiple of 8) in NCHW layout and
    # flatten (T, V) -> T*V.  Reshapes are free (row-major); no transposes anywhere.
    xp = jnp.pad(x, ((0, 0), (0, C8 - C), (PAD, PAD), (0, 0))).reshape(N, C8, Tp * V)

    f32 = jnp.float32
    w1k = w1[:, :, :, 0].astype(f32)      # (C, O, K)
    wrk = wr[:, :, 0, 0].astype(f32)      # (C, O)
    if C8 != C:
        w1k = jnp.pad(w1k, ((0, C8 - C), (0, 0), (0, 0)))
        wrk = jnp.pad(wrk, ((0, C8 - C), (0, 0)))

    # Pass-1 fused weight (2O, 3C8): first O rows -> main branch, last O -> residual.
    w_y1 = jnp.concatenate([w1k[:, :, 0], w1k[:, :, 1], w1k[:, :, 2]], axis=0)   # (3C8, O)
    w_res = jnp.concatenate([jnp.zeros_like(wrk), wrk, jnp.zeros_like(wrk)], axis=0)
    w_stat_t = jnp.concatenate([w_y1, w_res], axis=1).T.astype(x.dtype)          # (2O, 3C8)

    # VMEM budget per grid step (double-buffered blocks + kernel temporaries).
    itemsize = jnp.dtype(x.dtype).itemsize
    vbytes = (2 * itemsize * C8 * Tp * V            # double-buffered input block
              + 4 * (3 * C8 * TV + 4 * O * TV)      # im2col stack + matmul/output tiles
              + 4 * 8 * O * 3 * C8 + (1 << 20))
    cparams = pltpu.CompilerParams(
        dimension_semantics=("parallel",),          # batch axis -> both v7x TensorCores
        vmem_limit_bytes=int(min(max(2 * vbytes, 16 << 20), 48 << 20)))

    x_spec = pl.BlockSpec((None, C8, Tp * V), lambda n: (n, 0, 0))

    # ---- Pass 1: per-sample partial sum / sum-of-squares of both pre-BN branches.
    psum, psq = pl.pallas_call(
        functools.partial(_stats_kernel, T=T, V=V),
        grid=(N,),
        in_specs=[x_spec, pl.BlockSpec((2 * O, 3 * C8), lambda n: (0, 0))],
        out_specs=(pl.BlockSpec((None, 2 * O, 1), lambda n: (n, 0, 0)),
                   pl.BlockSpec((None, 2 * O, 1), lambda n: (n, 0, 0))),
        out_shape=(jax.ShapeDtypeStruct((N, 2 * O, 1), f32),
                   jax.ShapeDtypeStruct((N, 2 * O, 1), f32)),
        compiler_params=cparams,
    )(xp, w_stat_t)

    # ---- Tiny per-channel BN math (O(N*O) work, plain XLA).
    m = float(N * T * V)
    mean = jnp.sum(psum, axis=0)[:, 0] / m                                   # (2O,)
    var = jnp.maximum(jnp.sum(psq, axis=0)[:, 0] / m - mean * mean, 0.0)     # clamp >= 0
    gamma = jnp.concatenate([g1, gr]).astype(f32)
    beta = jnp.concatenate([bt1, btr]).astype(f32)
    a = gamma * jax.lax.rsqrt(var + EPS)          # per-branch BN scale
    shift = beta - a * mean                       # per-branch BN shift
    a1, ar = a[:O], a[O:]

    # ---- Pass 2: fold BN scales + residual into one (O, 3C8) weight + per-channel shift.
    w2_t = jnp.concatenate([w1k[:, :, 0] * a1,
                            w1k[:, :, 1] * a1 + wrk * ar,
                            w1k[:, :, 2] * a1], axis=0).T.astype(x.dtype)    # (O, 3C8)
    c2 = (shift[:O] + shift[O:]).reshape(O, 1)

    out = pl.pallas_call(
        functools.partial(_apply_kernel, T=T, V=V),
        grid=(N,),
        in_specs=[x_spec,
                  pl.BlockSpec((O, 3 * C8), lambda n: (0, 0)),
                  pl.BlockSpec((O, 1), lambda n: (0, 0))],
        out_specs=pl.BlockSpec((None, O, TV), lambda n: (n, 0, 0)),
        out_shape=jax.ShapeDtypeStruct((N, O, TV), x.dtype),
        compiler_params=cparams,
    )(xp, w2_t, c2)

    return out.reshape(N, O, T, V)                # NCHW, no transpose needed


def _reference(x, w1, b1, g1, bt1, wr, br, gr, btr):
    """Pure numpy float64 reference of the PyTorch forward (training-mode BN)."""
    x = np.asarray(x, np.float64)
    w1 = np.asarray(w1, np.float64)[:, :, :, 0]                 # (C, O, K)
    wr = np.asarray(wr, np.float64)[:, :, 0, 0]                 # (C, O)
    N, C, T, V = x.shape
    O = w1.shape[1]

    def bn(y, g, b):
        mu = y.mean(axis=(0, 2, 3), keepdims=True)
        var = ((y - mu) ** 2).mean(axis=(0, 2, 3), keepdims=True)
        return ((y - mu) / np.sqrt(var + EPS)
                * np.asarray(g, np.float64).reshape(1, -1, 1, 1)
                + np.asarray(b, np.float64).reshape(1, -1, 1, 1))

    y = np.zeros((N, O, T, V)) + np.asarray(b1, np.float64).reshape(1, O, 1, 1)
    for j in range(KERNEL_SIZE):
        for t in range(T):
            src = t + PAD - j * DILATION
            if 0 <= src < T:
                y[:, :, t, :] += np.einsum('ncv,co->nov', x[:, :, src, :], w1[:, :, j])
    y = bn(y, g1, bt1)

    r = np.einsum('nctv,co->notv', x, wr) + np.asarray(br, np.float64).reshape(1, O, 1, 1)
    r = bn(r, gr, btr)
    return y + r  # 'linear' activation == identity


if __name__ == "__main__":
    # small shapes: batch=2, in_channels=4, T=16, V=8, out_channels=6 (multiple of 3 branches)
    N, C_in, T, V = 2, 4, 16, 8
    C_out = 6

    key = jax.random.PRNGKey(0)
    ks = jax.random.split(key, 9)
    x = jax.random.normal(ks[0], (N, C_in, T, V), jnp.float32)
    # anticonv1: ConvTranspose2d weight (C_in, C_out, K, 1), bias (C_out,), BN gamma/beta
    w1 = 0.3 * jax.random.normal(ks[1], (C_in, C_out, KERNEL_SIZE, 1), jnp.float32)
    b1 = 0.1 * jax.random.normal(ks[2], (C_out,), jnp.float32)
    g1 = 1.0 + 0.1 * jax.random.normal(ks[3], (C_out,), jnp.float32)
    bt1 = 0.1 * jax.random.normal(ks[4], (C_out,), jnp.float32)
    # residual: ConvTranspose2d weight (C_in, C_out, 1, 1), bias, BN gamma/beta
    wr = 0.3 * jax.random.normal(ks[5], (C_in, C_out, 1, 1), jnp.float32)
    br = 0.1 * jax.random.normal(ks[6], (C_out,), jnp.float32)
    gr = 1.0 + 0.1 * jax.random.normal(ks[7], (C_out,), jnp.float32)
    btr = 0.1 * jax.random.normal(ks[8], (C_out,), jnp.float32)

    params = (w1, b1, g1, bt1, wr, br, gr, btr)
    out = jax.block_until_ready(jax.jit(multiscale_anti_tconv)(x, params))

    ref = _reference(x, w1, b1, g1, bt1, wr, br, gr, btr)
    # DEFAULT-precision MXU (bf16 passes) => relaxed tolerance vs the float64 reference.
    np.testing.assert_allclose(np.asarray(out), ref, rtol=5e-2, atol=5e-2)
    assert out.shape == (N, C_out, T, V)
    print("KERNEL_OK")
</pallas_src>

<mosaic_0001>
module attributes {stable_mosaic.version = 11 : i64} {
  func.func @_stats_kernel(%arg0: i32, %arg1: memref<1x8x192xf32, #tpu.memory_space<vmem>>, %arg2: memref<12x24xf32, #tpu.memory_space<vmem>>, %arg3: memref<1x12x1xf32, #tpu.memory_space<vmem>>, %arg4: memref<1x12x1xf32, #tpu.memory_space<vmem>>) attributes {dimension_semantics = [#tpu.dimension_semantics<parallel>], iteration_bounds = array<i64: 2>, scalar_prefetch = 0 : i64, scratch_operands = 0 : i64, tpu.core_type = #tpu.core_type<tc>, window_params = [{transform_indices = @transform_0, window_bounds = array<i64: 1, 8, 192>}, {pipeline_mode = #tpu.pipeline_mode<synchronous>, transform_indices = @transform_1, window_bounds = array<i64: 12, 24>}, {transform_indices = @transform_2, window_bounds = array<i64: 1, 12, 1>}, {transform_indices = @transform_3, window_bounds = array<i64: 1, 12, 1>}]} {
    %c0 = arith.constant 0 : index
    %c0_0 = arith.constant 0 : index
    %c0_1 = arith.constant 0 : index
    %0 = vector.load %arg1[%c0, %c0_0, %c0_1] : memref<1x8x192xf32, #tpu.memory_space<vmem>>, vector<1x8x192xf32>
    %1 = vector.shape_cast %0 : vector<1x8x192xf32> to vector<8x192xf32>
    %2 = vector.extract_strided_slice %1 {offsets = [0, 64], sizes = [8, 128], strides = [1, 1]} : vector<8x192xf32> to vector<8x128xf32>
    %3 = vector.extract_strided_slice %1 {offsets = [0, 32], sizes = [8, 128], strides = [1, 1]} : vector<8x192xf32> to vector<8x128xf32>
    %4 = vector.extract_strided_slice %1 {offsets = [0, 0], sizes = [8, 128], strides = [1, 1]} : vector<8x192xf32> to vector<8x128xf32>
    %5 = tpu.concatenate %2, %3, %4 in 0 : vector<8x128xf32>, vector<8x128xf32>, vector<8x128xf32> -> vector<24x128xf32>
    %c0_2 = arith.constant 0 : index
    %c0_3 = arith.constant 0 : index
    %6 = vector.load %arg2[%c0_2, %c0_3] : memref<12x24xf32, #tpu.memory_space<vmem>>, vector<12x24xf32>
    %cst = arith.constant dense<0.000000e+00> : vector<12x128xf32>
    %7 = tpu.matmul %6, %5, %cst {dimension_numbers = #tpu.dot_dimension_numbers<[1], [0], [0], [1], [0, 0, 1, 1], [], []>} : vector<12x24xf32>, vector<24x128xf32>, vector<12x128xf32> -> vector<12x128xf32>
    %cst_4 = arith.constant dense<0.000000e+00> : vector<12xf32>
    %8 = vector.multi_reduction <add>, %7, %cst_4 [1] : vector<12x128xf32> to vector<12xf32>
    %9 = vector.shape_cast %8 : vector<12xf32> to vector<12x1xf32>
    %c0_5 = arith.constant 0 : index
    %c0_6 = arith.constant 0 : index
    %c0_7 = arith.constant 0 : index
    %10 = vector.load %arg3[%c0_5, %c0_6, %c0_7] : memref<1x12x1xf32, #tpu.memory_space<vmem>>, vector<1x12x1xf32>
    %11 = vector.shape_cast %10 : vector<1x12x1xf32> to vector<12x1xf32>
    %12 = vector.shape_cast %9 : vector<12x1xf32> to vector<1x12x1xf32>
    tpu.vector_store %arg3[%c0_5, %c0_6, %c0_7], %12 {strides = array<i32>} : memref<1x12x1xf32, #tpu.memory_space<vmem>>, vector<1x12x1xf32>,
    %13 = arith.mulf %7, %7 : vector<12x128xf32>
    %cst_8 = arith.constant dense<0.000000e+00> : vector<12xf32>
    %14 = vector.multi_reduction <add>, %13, %cst_8 [1] : vector<12x128xf32> to vector<12xf32>
    %15 = vector.shape_cast %14 : vector<12xf32> to vector<12x1xf32>
    %c0_9 = arith.constant 0 : index
    %c0_10 = arith.constant 0 : index
    %c0_11 = arith.constant 0 : index
    %16 = vector.load %arg4[%c0_9, %c0_10, %c0_11] : memref<1x12x1xf32, #tpu.memory_space<vmem>>, vector<1x12x1xf32>
    %17 = vector.shape_cast %16 : vector<1x12x1xf32> to vector<12x1xf32>
    %18 = vector.shape_cast %15 : vector<12x1xf32> to vector<1x12x1xf32>
    tpu.vector_store %arg4[%c0_9, %c0_10, %c0_11], %18 {strides = array<i32>} : memref<1x12x1xf32, #tpu.memory_space<vmem>>, vector<1x12x1xf32>,
    return
  }
  func.func @transform_0(%arg0: i32) -> (i32, i32, i32) {
    %c0_i32 = arith.constant 0 : i32
    %c0_i32_0 = arith.constant 0 : i32
    %c0_i32_1 = arith.constant 0 : i32
    return %arg0, %c0_i32, %c0_i32_0 : i32, i32, i32
  }
  func.func @transform_1(%arg0: i32) -> (i32, i32) {
    %c0_i32 = arith.constant 0 : i32
    %c0_i32_0 = arith.constant 0 : i32
    %c0_i32_1 = arith.constant 0 : i32
    return %c0_i32, %c0_i32_0 : i32, i32
  }
  func.func @transform_2(%arg0: i32) -> (i32, i32, i32) {
    %c0_i32 = arith.constant 0 : i32
    %c0_i32_0 = arith.constant 0 : i32
    %c0_i32_1 = arith.constant 0 : i32
    return %arg0, %c0_i32, %c0_i32_0 : i32, i32, i32
  }
  func.func @transform_3(%arg0: i32) -> (i32, i32, i32) {
    %c0_i32 = arith.constant 0 : i32
    %c0_i32_0 = arith.constant 0 : i32
    %c0_i32_1 = arith.constant 0 : i32
    return %arg0, %c0_i32, %c0_i32_0 : i32, i32, i32
  }
}

module attributes {stable_mosaic.version = 11 : i64} {
  func.func @_apply_kernel(%arg0: i32, %arg1: memref<1x8x192xf32, #tpu.memory_space<vmem>>, %arg2: memref<6x24xf32, #tpu.memory_space<vmem>>, %arg3: memref<6x1xf32, #tpu.memory_space<vmem>>, %arg4: memref<1x6x128xf32, #tpu.memory_space<vmem>>) attributes {dimension_semantics = [#tpu.dimension_semantics<parallel>], iteration_bounds = array<i64: 2>, scalar_prefetch = 0 : i64, scratch_operands = 0 : i64, tpu.core_type = #tpu.core_type<tc>, window_params = [{transform_indices = @transform_0, window_bounds = array<i64: 1, 8, 192>}, {pipeline_mode = #tpu.pipeline_mode<synchronous>, transform_indices = @transform_1, window_bounds = array<i64: 6, 24>}, {pipeline_mode = #tpu.pipeline_mode<synchronous>, transform_indices = @transform_2, window_bounds = array<i64: 6, 1>}, {transform_indices = @transform_3, window_bounds = array<i64: 1, 6, 128>}]} {
    %c0 = arith.constant 0 : index
    %c0_0 = arith.constant 0 : index
    %c0_1 = arith.constant 0 : index
    %0 = vector.load %arg1[%c0, %c0_0, %c0_1] : memref<1x8x192xf32, #tpu.memory_space<vmem>>, vector<1x8x192xf32>
    %1 = vector.shape_cast %0 : vector<1x8x192xf32> to vector<8x192xf32>
    %2 = vector.extract_strided_slice %1 {offsets = [0, 64], sizes = [8, 128], strides = [1, 1]} : vector<8x192xf32> to vector<8x128xf32>
    %3 = vector.extract_strided_slice %1 {offsets = [0, 32], sizes = [8, 128], strides = [1, 1]} : vector<8x192xf32> to vector<8x128xf32>
    %4 = vector.extract_strided_slice %1 {offsets = [0, 0], sizes = [8, 128], strides = [1, 1]} : vector<8x192xf32> to vector<8x128xf32>
    %5 = tpu.concatenate %2, %3, %4 in 0 : vector<8x128xf32>, vector<8x128xf32>, vector<8x128xf32> -> vector<24x128xf32>
    %c0_2 = arith.constant 0 : index
    %c0_3 = arith.constant 0 : index
    %6 = vector.load %arg2[%c0_2, %c0_3] : memref<6x24xf32, #tpu.memory_space<vmem>>, vector<6x24xf32>
    %cst = arith.constant dense<0.000000e+00> : vector<6x128xf32>
    %7 = tpu.matmul %6, %5, %cst {dimension_numbers = #tpu.dot_dimension_numbers<[1], [0], [0], [1], [0, 0, 1, 1], [], []>} : vector<6x24xf32>, vector<24x128xf32>, vector<6x128xf32> -> vector<6x128xf32>
    %c0_4 = arith.constant 0 : index
    %c0_5 = arith.constant 0 : index
    %8 = vector.load %arg3[%c0_4, %c0_5] : memref<6x1xf32, #tpu.memory_space<vmem>>, vector<6x1xf32>
    %9 = vector.broadcast %8 : vector<6x1xf32> to vector<6x128xf32>
    %10 = arith.addf %7, %9 : vector<6x128xf32>
    %c0_6 = arith.constant 0 : index
    %c0_7 = arith.constant 0 : index
    %c0_8 = arith.constant 0 : index
    %11 = vector.load %arg4[%c0_6, %c0_7, %c0_8] : memref<1x6x128xf32, #tpu.memory_space<vmem>>, vector<1x6x128xf32>
    %12 = vector.shape_cast %11 : vector<1x6x128xf32> to vector<6x128xf32>
    %13 = vector.shape_cast %10 : vector<6x128xf32> to vector<1x6x128xf32>
    tpu.vector_store %arg4[%c0_6, %c0_7, %c0_8], %13 {strides = array<i32>} : memref<1x6x128xf32, #tpu.memory_space<vmem>>, vector<1x6x128xf32>,
    return
  }
  func.func @transform_0(%arg0: i32) -> (i32, i32, i32) {
    %c0_i32 = arith.constant 0 : i32
    %c0_i32_0 = arith.constant 0 : i32
    %c0_i32_1 = arith.constant 0 : i32
    return %arg0, %c0_i32, %c0_i32_0 : i32, i32, i32
  }
  func.func @transform_1(%arg0: i32) -> (i32, i32) {
    %c0_i32 = arith.constant 0 : i32
    %c0_i32_0 = arith.constant 0 : i32
    %c0_i32_1 = arith.constant 0 : i32
    return %c0_i32, %c0_i32_0 : i32, i32
  }
  func.func @transform_2(%arg0: i32) -> (i32, i32) {
    %c0_i32 = arith.constant 0 : i32
    %c0_i32_0 = arith.constant 0 : i32
    %c0_i32_1 = arith.constant 0 : i32
    return %c0_i32, %c0_i32_0 : i32, i32
  }
  func.func @transform_3(%arg0: i32) -> (i32, i32, i32) {
    %c0_i32 = arith.constant 0 : i32
    %c0_i32_0 = arith.constant 0 : i32
    %c0_i32_1 = arith.constant 0 : i32
    return %arg0, %c0_i32, %c0_i32_0 : i32, i32, i32
  }
}

</mosaic_0001>

<bundles_post_ra>
// kernel: multiscale_anti_tconv.2
= control target key start
LH: loop header
LB: loop body
LE: loop exit
PB: predicated region body
PF: predicated region fallthrough
CT: control target
= control target key end

     0   :  { %s487_s12 = smov 0   ;;  %s520_s0 = inlined_call_operand.vmem [shape: f32[2,8,192], index: 0, kind: input, shape index: {}]   ;;  %s521_s1 = inlined_call_operand.vmem [shape: f32[12,24], index: 1, kind: input, shape index: {}]   ;;  %s522_s2 = inlined_call_operand.vmem [shape: f32[2,12,1], index: 2, kind: output, shape index: {0}]   ;;  %s523_s3 = inlined_call_operand.vmem [shape: f32[2,12,1], index: 3, kind: output, shape index: {1}]  }
   0x1 LB: > { %s401_s13 = sadd.s32 4294967295, %s463_s12   ;;  %p405_p0 = scmp.ge.s32.totalorder %s463_s12, 1  ;;  %s463_s12 = sphi %s487_s12, %s14_s12  }
   0x2   : > { %p140_p1 = scmp.lt.s32.totalorder %s463_s12, 3 }
   0x4   : > { %p141_p2 = pnand %p405_p0, %p140_p1 }
   0x5   : > { %p169_p3 = scmp.lt.s32.totalorder (!%p141_p2), %s401_s13, 1  ;;  %s465_s18 = smov (!%p141_p2), 32   ;;  %v196_v6 = vld [vmem:[%s521_s1] sm:$0xff] (!%p141_p2)  ;;  %vm212_vm0 = vcmask (!%p141_p2), 195584   ;;  %vm192_vm1 = vcmask (!%p141_p2), 261120   ;;  %vm206_vm2 = vcmask (!%p141_p2), 523264  }
   0x6   : > { %144 = sbr.rel (%p141_p2) target bundleno = 627 (0x273), region = 28  ;;  %s466_s19 = smov (!%p141_p2), 64   ;;  %430 = vmatprep.mubr.msk.f32.mxu0 (!%p141_p2), %vm212_vm0, %v196_v6  ;;  %v197_v18 = vld [vmem:[%s521_s1 + $0x8] sm:$0xf] (!%p141_p2)  ;;  %vm296_vm3 = vcmask (!%p141_p2), 1043456   ;;  %vm302_vm4 = vcmask (!%p141_p2), 3072  }
   0x7   : > { %vm300_vm5 = vcmask (!%p141_p2), 7168  }
   0xd   : > { %s525_s13 = smov (!%p169_p3, %s401_s13), 1 }
   0xe   : > { %s495_s14 = sshll.u32 %s525_s13, 4 }
   0xf   : > { %s173_s17 = scalar_lea.vmem %s520_s0, %s495_s14  ;;  %s178_s26 = scalar_lea.vmem %s522_s2, %s495_s14 }
  0x10   : > { %v184_v0 = vld [vmem:[%s173_s17] sm:$0xff]  ;;  %v185_v1 = vld [vmem:[%s173_s17 + $0x8] sm:$0xff]  ;;  %s183_s29 = scalar_lea.vmem %s523_s3, %s495_s14 }
  0x11   : > { %v447_v2 = vpack.i.bf16 %v185_v1, %v184_v0 }
  0x13   : > { %448 = vrot.lane.b32.xlu0 %v447_v2, %s465_s18 }
  0x17   : > { %194 = vrot.lane.b32.xlu0 %v184_v0, %s466_s19 }
  0x85   : > { %v449_v3 = vpop.permute.xlu0 %448 }
  0x86   : > { %v450_v4 = vunpack.i.l.bf16 %v449_v3  ;;  %v451_v7 = vunpack.i.h.bf16 %v449_v3 }
  0x88   : > { %v452_v5 = vpack.i.bf16 %v450_v4, %v185_v1  ;;  %v193_v9 = vsel %vm192_vm1, %v450_v4, %v451_v7 }
  0x89   : > { %v195_v8 = vpop.permute.xlu0 %194 }
  0x8a   : > { %453 = vrot.lane.b32.xlu1 %v452_v5, %s466_s19  ;;  %204 = vrot.lane.b32.xlu0 %v195_v8, %s466_s19 }
  0x8e   : > { %202 = vrot.lane.b32.xlu1 %v193_v9, %s466_s19 }
  0xfc   : > { %v454_v10 = vpop.permute.xlu1 %453  ;;  %v205_v17 = vpop.permute.xlu0 %204 }
  0xfd   : > { %v455_v11 = vunpack.i.l.bf16 %v454_v10  ;;  %v456_v12 = vunpack.i.h.bf16 %v454_v10 }
  0xff   : > { %v207_v15 = vsel %vm206_vm2, %v195_v8, %v455_v11 }
 0x100   : > { %v203_v13 = vpop.permute.xlu1 %202 }
 0x101   : > { %v208_v14 = vsel %vm206_vm2, %v456_v12, %v203_v13 }
 0x102   : > { %v433_v16 = vpack.c.bf16 %v208_v14, %v207_v15 }
 0x104   : > { %434 = vmatprep.subr.bf16.mxu0 %v433_v16 }
 0x105   : > { %436 = vmatpush3.bf16.msra.mxu0 %v433_v16 }
 0x106   : > { %428 = vmatprep.subr.mxu0 %v205_v17 }
 0x109   : > { %429 = vmatpush3.msra.mxu0 %v205_v17 }
 0x10a   : > { %431 = vmatmul.mubr.msk.f32.vlgmr.msra.gmra.mrb[0].mxu0 %vm212_vm0, %v197_v18 }
 0x1dd   : > { %v432_v19 = vpop.f32.mrb[0].mxu0 }
 0x1de   : > { %v305_v20 = vmul.f32 %v432_v19, %v432_v19  ;;  %v285_v21 = vpop.f32.mrb[1].mxu0  ;;  %v297_v22 = vsel %vm296_vm3, %v432_v19, 0.0 }
 0x1df   : > { %298 = vadd.xlane.f32.xlu0 %v297_v22  ;;  %294 = vadd.xlane.f32.xlu1 %v285_v21  ;;  %v304_v23 = vmul.f32 %v285_v21, %v285_v21 }
 0x1e0   : > { %v308_v24 = vsel %vm296_vm3, %v305_v20, 0.0 }
 0x1e3   : > { %309 = vadd.xlane.f32.xlu1 %v308_v24  ;;  %306 = vadd.xlane.f32.xlu0 %v304_v23 }
 0x26c   : > { %v299_v25 = vpop.xlane.xlu0 %298  ;;  %v295_v26 = vpop.xlane.xlu1 %294 }
 0x26d   : > { %303 = vst.msk [vmem:[%s178_s26 + $0x8] sm:$0xf] %vm302_vm4, %v299_v25 }
 0x26e   : > { %301 = vst.msk [vmem:[%s178_s26] sm:$0xff] %vm300_vm5, %v295_v26 }
 0x270   : > { %v310_v27 = vpop.xlane.xlu1 %309  ;;  %v307_v28 = vpop.xlane.xlu0 %306 }
 0x271   : > { %312 = vst.msk [vmem:[%s183_s29 + $0x8] sm:$0xf] %vm302_vm4, %v310_v27 }
 0x272   : > { %311 = vst.msk [vmem:[%s183_s29] sm:$0xff] %vm300_vm5, %v307_v28 }
 0x273 PF: > { %s14_s12 = sadd.s32 1, %s463_s12  }
 0x274   : > { %p11_p4 = scmp.ge.s32.totalorder %s14_s12, 4  }
 0x276   :  { %13 = sbr.rel (!%p11_p4) target bundleno = 1 (0x1), region = 70 }

// kernel: multiscale_anti_tconv.3
= control target key start
LH: loop header
LB: loop body
LE: loop exit
PB: predicated region body
PF: predicated region fallthrough
CT: control target
= control target key end

     0   :  { %s418_s12 = smov 0   ;;  %s445_s0 = inlined_call_operand.vmem [shape: f32[2,8,192], index: 0, kind: input, shape index: {}]   ;;  %s446_s1 = inlined_call_operand.vmem [shape: f32[6,24], index: 1, kind: input, shape index: {}]   ;;  %s447_s2 = inlined_call_operand.vmem [shape: f32[6,1], index: 2, kind: input, shape index: {}]   ;;  %s448_s3 = inlined_call_operand.vmem [shape: f32[2,6,128], index: 3, kind: output, shape index: {}]  }
   0x1 LB: > { %s330_s13 = sadd.s32 4294967295, %s390_s12   ;;  %p334_p0 = scmp.ge.s32.totalorder %s390_s12, 1  ;;  %s390_s12 = sphi %s418_s12, %s13_s12  }
   0x2   : > { %p137_p1 = scmp.lt.s32.totalorder %s390_s12, 3 }
   0x4   : > { %p138_p2 = pnand %p334_p0, %p137_p1 }
   0x5   : > { %p160_p3 = scmp.lt.s32.totalorder (!%p138_p2), %s330_s13, 1  ;;  %s392_s18 = smov (!%p138_p2), 32   ;;  %v394_v3 = vmov (!%p138_p2), 0.0|0.0   ;;  %vm395_vm0 = vmmov (!%p138_p2), 0   ;;  %v396_v7 = vmov (!%p138_p2), 0.0   ;;  %vm177_vm1 = vcmask (!%p138_p2), 261120  }
   0x6   : > { %141 = sbr.rel (%p138_p2) target bundleno = 480 (0x1e0), region = 32  ;;  %s393_s19 = smov (!%p138_p2), 64   ;;  %355 = vmatprep.subr.bf16.mxu0 (!%p138_p2), %v394_v3  ;;  %352 = vmatprep.mubr.msk.f32.mxu0 (!%p138_p2), %vm395_vm0, %v396_v7  ;;  %v397_v10 = vmov (!%p138_p2), 0   ;;  %v182_v12 = vld [vmem:[%s447_s2] sm:$0x3f] (!%p138_p2)  ;;  %vm196_vm2 = vcmask (!%p138_p2), 523264  }
   0x7   : > { %382 = vset.pattern.permute.xlu1 (!%p138_p2), %v397_v10  ;;  %383 = vset.pattern.permute.xlu0 (!%p138_p2), %v397_v10  ;;  %v181_v21 = vld [vmem:[%s446_s1] sm:$0x3f] (!%p138_p2)  ;;  %vm202_vm3 = vcmask (!%p138_p2), 195584  }
   0xd   : > { %s450_s13 = smov (!%p160_p3, %s330_s13), 1 }
   0xe   : > { %s341_s14 = sshll.u32 %s450_s13, 4  ;;  %s337_s24 = sshll.u32 %s450_s13, 3 }
   0xf   : > { %s164_s17 = scalar_lea.vmem %s445_s0, %s341_s14  ;;  %s168_s27 = scalar_lea.vmem %s448_s3, %s337_s24 }
  0x10   : > { %v169_v0 = vld [vmem:[%s164_s17] sm:$0xff]  ;;  %v170_v1 = vld [vmem:[%s164_s17 + $0x8] sm:$0xff] }
  0x11   : > { %v372_v2 = vpack.i.bf16 %v170_v1, %v169_v0 }
  0x13   : > { %373 = vrot.lane.b32.xlu0 %v372_v2, %s392_s18 }
  0x17   : > { %179 = vrot.lane.b32.xlu0 %v169_v0, %s393_s19 }
  0x85   : > { %v374_v4 = vpop.permute.xlu0 %373 }
  0x86   : > { %v375_v5 = vunpack.i.l.bf16 %v374_v4  ;;  %v376_v8 = vunpack.i.h.bf16 %v374_v4 }
  0x88   : > { %v377_v6 = vpack.i.bf16 %v375_v5, %v170_v1  ;;  %v178_v11 = vsel %vm177_vm1, %v375_v5, %v376_v8 }
  0x89   : > { %v180_v9 = vpop.permute.xlu0 %179 }
  0x8a   : > { %378 = vrot.lane.b32.xlu1 %v377_v6, %s393_s19  ;;  %194 = vrot.lane.b32.xlu0 %v180_v9, %s393_s19 }
  0x8e   : > { %192 = vrot.lane.b32.xlu1 %v178_v11, %s393_s19 }
  0x92   : > { %185 = vperm.xlu1 %382, %v182_v12  }
  0xfc   : > { %v379_v13 = vpop.permute.xlu1 %378  ;;  %v195_v20 = vpop.permute.xlu0 %194 }
  0xfd   : > { %v380_v14 = vunpack.i.l.bf16 %v379_v13  ;;  %v381_v15 = vunpack.i.h.bf16 %v379_v13 }
  0xff   : > { %v197_v18 = vsel %vm196_vm2, %v180_v9, %v380_v14 }
 0x100   : > { %v193_v16 = vpop.permute.xlu1 %192 }
 0x101   : > { %v198_v17 = vsel %vm196_vm2, %v381_v15, %v193_v16 }
 0x102   : > { %v356_v19 = vpack.c.bf16 %v198_v17, %v197_v18 }
 0x104   : > { %357 = vmatpush3.bf16.msra.mxu0 %v356_v19 }
 0x105   : > { %350 = vmatprep.subr.mxu0 %v396_v7 }
 0x108   : > { %351 = vmatpush3.msra.mxu0 %v195_v20 }
 0x109   : > { %353 = vmatmul.mubr.msk.f32.vlgmr.msra.gmra.mrb[0].mxu0 %vm202_vm3, %v181_v21 }
 0x111   : > { %v186_v22 = vpop.permute.xlu1 %185 }
 0x1dc   : > { %v272_v23 = vpop.f32.mrb[0].mxu0 }
 0x1dd   : > { %v273_v24 = vadd.f32 %v272_v23, %v186_v22  ;;  %v354_v25 = vpop.f32.mrb[1].mxu0 }
 0x1df   : > { %276 = vst [vmem:[%s168_s27] sm:$0x3f] %v273_v24 }
 0x1e0 PF: > { %s13_s12 = sadd.s32 1, %s390_s12  }
 0x1e1   : > { %p10_p4 = scmp.ge.s32.totalorder %s13_s12, 4  }
 0x1e3   :  { %12 = sbr.rel (!%p10_p4) target bundleno = 1 (0x1), region = 62 }

</bundles_post_ra>
